<compile_context>
chip_gen: v5e
topology: v5e:2x2
jax: 0.10.0
libtpu: 0.0.40
codegen_flags: <defaults>
</compile_context>

<pallas_src>
import functools

import jax
import jax.numpy as jnp
from jax.experimental import pallas as pl
from jax.experimental.pallas import tpu as pltpu

# ImageNet normalization constants used by the PyTorch module
_MEAN = (0.485, 0.456, 0.406)
_STD = (0.229, 0.224, 0.225)

# VMEM sublane tile height per itemsize (f32 -> 8, bf16 -> 16, u8/i8 -> 32)
_SUBLANES = {4: 8, 2: 16, 1: 32}
_MAX_LANE = 65536


def _round_up(x, m):
    return (x + m - 1) // m * m


def _vmem_capacity_bytes():
    """Per-core VMEM capacity; conservative v7x default if query unavailable."""
    try:
        cap = getattr(pltpu.get_tpu_info(), "vmem_capacity_bytes", None)
        if cap:
            return int(cap)
    except Exception:
        pass
    return 64 * 1024 * 1024


def _padded_block_bytes(r, lane, dtype):
    """VMEM footprint of an (r, lane) block including sublane/lane tiling pad."""
    dt = jnp.dtype(dtype)
    sub = _SUBLANES.get(dt.itemsize, 8)
    return _round_up(r, sub) * _round_up(lane, 128) * dt.itemsize


def _pick_lane(hw_pad, want_split):
    """Largest lane (multiple of 128, divides hw_pad) giving dense sublanes."""
    base = hw_pad // 128
    lanes = [d * 128 for d in range(1, base + 1)
             if base % d == 0 and d * 128 <= _MAX_LANE]

    def rows_of(lane):
        return hw_pad // lane

    tiers = (
        lambda l: rows_of(l) % 32 == 0 and l >= 512,   # dense for every dtype
        lambda l: rows_of(l) % 8 == 0 and l >= 512,    # dense for f32
        lambda l: rows_of(l) >= (2 if want_split else 1),
    )
    for pred in tiers:
        sel = [l for l in lanes if pred(l)]
        if sel:
            return max(sel)
    return max(lanes)


def _choose_tiling(hw_pad, in_dtype, out_dtype, budget_bytes, want_split):
    """Factor hw_pad = rows * lane and choose the row-block R per grid step."""
    lane = _pick_lane(hw_pad, want_split)
    rows = hw_pad // lane

    def ppb(r):  # padded, double-buffered in + out footprint for one step
        return 2 * (_padded_block_bytes(r, lane, in_dtype)
                    + _padded_block_bytes(r, lane, out_dtype))

    divisors = [d for d in range(1, rows + 1) if rows % d == 0]
    # legal second-to-last block dims: multiple of 8 or the full extent
    legal = [d for d in divisors if d % 8 == 0 or d == rows]
    if want_split and rows > 1:
        nonfull = [d for d in legal if d < rows]
        if nonfull:  # force >= 2 grid steps (keeps both v7x TCs busy)
            legal = nonfull
    fitting = [d for d in legal if ppb(d) <= budget_bytes]
    if fitting:
        dense = [d for d in fitting if d % 32 == 0]
        r_block = max(dense) if dense else max(fitting)
    else:
        r_block = min(legal)
    return r_block, lane, rows


def _normalize_kernel(scale_ref, shift_ref, x_ref, o_ref, *, num_channels):
    # scale_ref, shift_ref: SMEM (C,) float32 scalars
    # x_ref, o_ref:         VMEM (1, R, lane)
    ch = pl.program_id(0) % num_channels
    x = x_ref[...].astype(jnp.float32)
    o_ref[...] = (x * scale_ref[ch] + shift_ref[ch]).astype(o_ref.dtype)


def normalize(x, out_dtype=None):
    """x: (N, C, H, W) array (float or uint8 in [0, 255]), C <= 3 (NCHW)."""
    n, c, h, w = x.shape
    assert 1 <= c <= len(_MEAN), "Normalize supports at most 3 channels"
    if out_dtype is None:
        # integer inputs must produce a float output (values are ~[-2.2, 2.7])
        out_dtype = jnp.float32 if jnp.issubdtype(x.dtype, jnp.integer) else x.dtype
    out_dtype = jnp.dtype(out_dtype)

    mean = jnp.asarray(_MEAN[:c], dtype=jnp.float32)
    std = jnp.asarray(_STD[:c], dtype=jnp.float32)
    scale = 1.0 / (255.0 * std)      # (C,)
    shift = -mean / std              # (C,)

    hw = h * w
    hw_pad = _round_up(hw, 128)      # lane axis always a multiple of 128

    cap = _vmem_capacity_bytes()
    budget = int(cap * 0.7)          # padded, double-buffered in+out per step
    vmem_limit = int(max(32 * 1024 * 1024,
                         min(cap - (8 << 20), budget + (16 << 20))))

    r_block, lane, rows = _choose_tiling(
        hw_pad, x.dtype, out_dtype, budget, want_split=(n * c == 1))

    x_flat = x.reshape(n * c, hw)
    if hw_pad != hw:
        x_flat = jnp.pad(x_flat, ((0, 0), (0, hw_pad - hw)))
    x3 = x_flat.reshape(n * c, rows, lane)

    bytes_accessed = (x3.size * x3.dtype.itemsize
                      + x3.size * out_dtype.itemsize)

    kernel = functools.partial(_normalize_kernel, num_channels=c)
    out3 = pl.pallas_call(
        kernel,
        out_shape=jax.ShapeDtypeStruct((n * c, rows, lane), out_dtype),
        grid=(n * c, rows // r_block),
        in_specs=[
            pl.BlockSpec(memory_space=pltpu.MemorySpace.SMEM),        # scale (C,)
            pl.BlockSpec(memory_space=pltpu.MemorySpace.SMEM),        # shift (C,)
            pl.BlockSpec((1, r_block, lane), lambda i, s: (i, s, 0)),  # x
        ],
        out_specs=pl.BlockSpec((1, r_block, lane), lambda i, s: (i, s, 0)),
        compiler_params=pltpu.CompilerParams(
            dimension_semantics=("parallel", "parallel"),
            vmem_limit_bytes=vmem_limit,
        ),
        cost_estimate=pl.CostEstimate(
            flops=2 * n * c * hw_pad,
            bytes_accessed=int(bytes_accessed),
            transcendentals=0,
        ),
    )(scale, shift, x3)

    out = out3.reshape(n * c, hw_pad)
    if hw_pad != hw:
        out = out[:, :hw]
    return out.reshape(n, c, h, w)


if __name__ == "__main__":
    key = jax.random.PRNGKey(0)

    # Float path: batch=2, channels=3 (RGB), spatial 16x16, values in [0, 255]
    x = jax.random.uniform(key, (2, 3, 16, 16), dtype=jnp.float32) * 255.0
    out = jax.block_until_ready(normalize(x))

    mean = jnp.asarray(_MEAN[:3], jnp.float32).reshape(1, 3, 1, 1)
    std = jnp.asarray(_STD[:3], jnp.float32).reshape(1, 3, 1, 1)
    ref = (x / 255.0 - mean) / std
    assert out.dtype == x.dtype
    assert jnp.allclose(out, ref, atol=1e-5, rtol=1e-5), "float32 mismatch"

    # uint8 path (non-128-aligned spatial; output defaults to float32)
    xu8 = (jax.random.uniform(jax.random.PRNGKey(1), (1, 3, 13, 19))
           * 255.0).astype(jnp.uint8)
    out_u8 = jax.block_until_ready(normalize(xu8))
    ref_u8 = (xu8.astype(jnp.float32) / 255.0 - mean) / std
    assert out_u8.dtype == jnp.float32
    assert jnp.allclose(out_u8, ref_u8, atol=1e-5, rtol=1e-5), "uint8 mismatch"

    print("KERNEL_OK")
</pallas_src>

<mosaic_0001>
module attributes {stable_mosaic.version = 11 : i64} {
  func.func @_normalize_kernel(%arg0: i32, %arg1: i32, %arg2: memref<3xf32, #tpu.memory_space<smem>>, %arg3: memref<3xf32, #tpu.memory_space<smem>>, %arg4: memref<1x1x256xf32, #tpu.memory_space<vmem>>, %arg5: memref<1x1x256xf32, #tpu.memory_space<vmem>>) attributes {dimension_semantics = [#tpu.dimension_semantics<parallel>, #tpu.dimension_semantics<parallel>], iteration_bounds = array<i64: 6, 1>, scalar_prefetch = 0 : i64, scratch_operands = 0 : i64, tpu.core_type = #tpu.core_type<tc>, window_params = [{transform_indices = @transform_0, window_bounds = array<i64: 3>}, {transform_indices = @transform_1, window_bounds = array<i64: 3>}, {transform_indices = @transform_2, window_bounds = array<i64: 1, 1, 256>}, {transform_indices = @transform_3, window_bounds = array<i64: 1, 1, 256>}]} {
    %c3_i32 = arith.constant 3 : i32
    %c0_i32 = arith.constant 0 : i32
    %0 = arith.cmpi eq, %c3_i32, %c0_i32 : i32
    %c1_i32 = arith.constant 1 : i32
    %1 = arith.select %0, %c1_i32, %c3_i32 : i32
    %2 = arith.remsi %arg0, %1 : i32
    %c0_i32_0 = arith.constant 0 : i32
    %3 = arith.cmpi ne, %2, %c0_i32_0 : i32
    %c0_i32_1 = arith.constant 0 : i32
    %4 = arith.cmpi slt, %2, %c0_i32_1 : i32
    %c0_i32_2 = arith.constant 0 : i32
    %5 = arith.cmpi slt, %1, %c0_i32_2 : i32
    %6 = arith.xori %4, %5 : i1
    %7 = arith.andi %6, %3 : i1
    %8 = arith.addi %2, %1 : i32
    %9 = arith.select %7, %8, %2 : i32
    %c0 = arith.constant 0 : index
    %c0_3 = arith.constant 0 : index
    %c0_4 = arith.constant 0 : index
    %10 = vector.load %arg4[%c0, %c0_3, %c0_4] : memref<1x1x256xf32, #tpu.memory_space<vmem>>, vector<1x1x256xf32>
    %11 = arith.index_cast %9 : i32 to index
    %12 = memref.load %arg2[%11] : memref<3xf32, #tpu.memory_space<smem>>
    %13 = vector.broadcast %12 : f32 to vector<1x1x256xf32>
    %14 = arith.mulf %10, %13 : vector<1x1x256xf32>
    %15 = arith.index_cast %9 : i32 to index
    %16 = memref.load %arg3[%15] : memref<3xf32, #tpu.memory_space<smem>>
    %17 = vector.broadcast %16 : f32 to vector<1x1x256xf32>
    %18 = arith.addf %14, %17 : vector<1x1x256xf32>
    %c0_5 = arith.constant 0 : index
    %c0_6 = arith.constant 0 : index
    %c0_7 = arith.constant 0 : index
    %19 = vector.load %arg5[%c0_5, %c0_6, %c0_7] : memref<1x1x256xf32, #tpu.memory_space<vmem>>, vector<1x1x256xf32>
    tpu.vector_store %arg5[%c0_5, %c0_6, %c0_7], %18 {strides = array<i32>} : memref<1x1x256xf32, #tpu.memory_space<vmem>>, vector<1x1x256xf32>,
    return
  }
  func.func @transform_0(%arg0: i32, %arg1: i32) -> i32 {
    %c0_i32 = arith.constant 0 : i32
    %c0_i32_0 = arith.constant 0 : i32
    return %c0_i32 : i32
  }
  func.func @transform_1(%arg0: i32, %arg1: i32) -> i32 {
    %c0_i32 = arith.constant 0 : i32
    %c0_i32_0 = arith.constant 0 : i32
    return %c0_i32 : i32
  }
  func.func @transform_2(%arg0: i32, %arg1: i32) -> (i32, i32, i32) {
    %c0_i32 = arith.constant 0 : i32
    %c0_i32_0 = arith.constant 0 : i32
    return %arg0, %arg1, %c0_i32 : i32, i32, i32
  }
  func.func @transform_3(%arg0: i32, %arg1: i32) -> (i32, i32, i32) {
    %c0_i32 = arith.constant 0 : i32
    %c0_i32_0 = arith.constant 0 : i32
    return %arg0, %arg1, %c0_i32 : i32, i32, i32
  }
}

</mosaic_0001>

<bundles_post_ra>
// kernel: tpu_custom_call.1
= control target key start
LH: loop header
LB: loop body
LE: loop exit
PB: predicated region body
PF: predicated region fallthrough
CT: control target
= control target key end

     0   :  { %8 = vsyncpa [#allocation5], 0  ;;  %s808_s0 = inlined_call_operand.hbm [shape: f32[3], index: 0, kind: input, shape index: {}]   ;;  %s809_s1 = inlined_call_operand.hbm [shape: f32[3], index: 1, kind: input, shape index: {}]   ;;  %s810_s2 = inlined_call_operand.hbm [shape: f32[6,1,256], index: 2, kind: input, shape index: {}]   ;;  %s811_s3 = inlined_call_operand.hbm [shape: f32[6,1,256], index: 3, kind: output, shape index: {}]  }
   0x1   :  { %9 = vsyncpa [#allocation7], 0 }
   0x2   :  { %10 = vsyncpa [#allocation3], 0 }
   0x3   :  { %12 = vsyncpa [#allocation3 + $0x1], 0 }
   0x4   :  { %13 = vsyncpa [#allocation4], 0 }
   0x5   :  { %15 = vsyncpa [#allocation4 + $0x1], 0  ;;  %s661_s12 = smov 0   ;;  %s663_s13 = smov 0  }
   0x6   :  { %s665_s14 = smov 0   ;;  %s667_s15 = smov 0  }
   0x7   :  { %s669_s16 = smov 0   ;;  %s671_s17 = smov 0  }
   0x8 LB: > { %s380_s18 = sadd.s32 4294967295, %s637_s17   ;;  %s381_s19 = sadd.s32 4294967294, %s637_s17   ;;  %s637_s17 = sphi %s671_s17, %s21_s17   ;;  %s633_s16 = sphi %s669_s16, %s821_s16   ;;  %s629_s15 = sphi %s667_s15, %s820_s15   ;;  %s625_s14 = sphi %s665_s14, %s819_s14   ;;  %s621_s13 = sphi %s663_s13, %s818_s13   ;;  %s617_s12 = sphi %s661_s12, %s817_s12  }
   0x9   : > { %p97_p0 = scmp.ne.s32.totalorder %s621_s13, %s617_s12  ;;  %p695_p1 = scmp.eq.s32.totalorder %s380_s18, 0 }
   0xa   : > { %p129_p2 = scmp.eq.s32.totalorder %s381_s19, 5  ;;  %p382_p4 = scmp.ge.s32.totalorder %s637_s17, 1 }
   0xb   : > { %p701_p3 = por %p695_p1, %p97_p0  ;;  %p136_p6 = scmp.lt.s32.totalorder %s637_s17, 7 }
   0xc   : > { %p706_p5 = por %p129_p2, %p97_p0  ;;  %s148_s25 = sshll.u32 %s808_s0, 4  ;;  %s149_s25 = int_to_ptr.hbm [resolvable:$true] %s148_s25 }
   0xd   : > { %p714_p7 = pnand %p382_p4, %p136_p6  ;;  %s158_s29 = sshll.u32 %s809_s1, 4  ;;  %s159_s29 = int_to_ptr.hbm [resolvable:$true] %s158_s29 }
   0xe   : > { %s639_s30 = smov [#allocation2]   ;;  %s640_s4 = smov [#allocation6]  }
   0xf   : > { %p412_p8 = pneg %p714_p7  ;;  %p123_p10 = scmp.eq.s32.totalorder %s380_s18, 5 }
  0x10   : > { %s33_s5 = sadd.s32 1, %s633_s16  ;;  %s84_s6 = sadd.s32 1, %s625_s14 }
  0x11   : > { %p413_p9 = pnand %p412_p8, %p695_p1  ;;  %p35_p11 = scmp.ge.s32.totalorder %s33_s5, 6 }
  0x12   : > { %p91_p12 = scmp.ne.s32.totalorder %s625_s14, %s621_s13  ;;  %p92_p13 = scmp.eq.s32.totalorder %s637_s17, 0 }
  0x13   : > { %415 = dma.hbm_to_smem (!%p413_p9), %s149_s25, 16, %s639_s30, [#allocation5]  }
  0x14   : > { %418 = dma.hbm_to_smem (!%p413_p9), %s159_s29, 16, %s640_s4, [#allocation7]  }
  0x15   : > { %s823_s5 = smov (%p35_p11, %s33_s5), 0  ;;  %p732_p0 = por %p123_p10, %p91_p12 }
  0x16   : > { %p429_p2 = scmp.lt.s32.totalorder %s637_s17, 6  ;;  %s79_s8 = ssub.s32 %s633_s16, %s823_s5 }
  0x17   : > { %s169_s9 = sand.u32 1, %s625_s14   ;;  %p82_p4 = scmp.eq.s32.totalorder %s79_s8, 0 }
  0x18   : > { %p93_p6 = por %p92_p13, %p91_p12  ;;  %s386_s10 = sshll.u32 %s169_s9, 1 }
  0x19   : > { %s387_s11 = sshll.u32 %s633_s16, 1  ;;  %s173_s27 = scalar_lea.vmem [#allocation8], %s386_s10 }
  0x1a   : > { %s742_s18 = scalar_select %p82_p4, %s625_s14, %s84_s6  }
  0x1b   : > { %s179_s24 = scalar_lea.hbm %s810_s2, %s387_s11  ;;  %s183_s28 = sshll.u32 %s173_s27, 4  ;;  %s184_s28 = int_to_ptr.vmem [resolvable:$true] %s183_s28 }
  0x1c   : > { %s181_s25 = sshll.u32 %s179_s24, 4  ;;  %p420_p8 = pnand %p429_p2, %p93_p6  ;;  %s182_s25 = int_to_ptr.hbm [resolvable:$true] %s181_s25 }
  0x1d   : > { %s170_s29 = scalar_lea.sflag [#allocation3], %s169_s9  ;;  %192 = sbr.rel (%p714_p7) target bundleno = 75 (0x4b), region = 32 }
  0x1e   : > { %422 = dma.hbm_to_vmem [thread:$0]  (!%p420_p8), %s182_s25, 32, %s184_s28, %s170_s29  }
  0x22   : > { %600 = dma.done.wait (%p695_p1), [#allocation5], 16  }
  0x23   : > { %602 = vsyncadd (%p695_p1), [#allocation5], 4294967280 }
  0x24   : > { %604 = dma.done.wait (%p695_p1), [#allocation7], 16  }
  0x25   : > { %606 = vsyncadd (%p695_p1), [#allocation7], 4294967280  ;;  %s760_s30 = sand.u32 1, %s621_s13  }
  0x26   : > { %s391_s26 = sshll.u32 %s760_s30, 1  ;;  %s205_s4 = scalar_lea.sflag [#allocation3], %s760_s30 }
  0x27   : > { %s208_s6 = scalar_lea.vmem [#allocation8], %s391_s26 }
  0x28   : > { %608 = dma.done.wait (%p701_p3), %s205_s4, 32  }
  0x29   : > { %610 = vsyncadd (%p701_p3), %s205_s4, 4294967264 }
  0x2a   : > { %214 = sfence }
  0x2b   : > { %s234_s20 = ssub.s32 0, %s629_s15  ;;  %p233_p1 = scmp.lt.s32.totalorder %s629_s15, 0  ;;  %v246_v0 = vld [vmem:[%s208_s6] sm:$0x3]  ;;  %v253_v1 = vlaneseq }
  0x2c   : > { %s393_s8 = smin.u32 %s629_s15, %s234_s20  ;;  %s397_s24 = sshll.u32 %s629_s15, 1 }
  0x2d   : > { %484 = sdivrem.u32 %s393_s8, 3  ;;  %s271_s28 = scalar_lea.hbm %s811_s3, %s397_s24  ;;  %vm255_vm0 = vcmp.lt.s32.totalorder %v253_v1, 256 }
  0x2e   : > { %s232_s29 = scalar_lea.vmem [#allocation9], %s391_s26  ;;  %s275_s20 = sshll.u32 %s271_s28, 4  ;;  %s276_s20 = int_to_ptr.hbm [resolvable:$true] %s275_s20 }
  0x2f   : > { %s273_s4 = sshll.u32 %s232_s29, 4  ;;  %s259_s15 = scalar_lea.sflag [#allocation4], %s760_s30  ;;  %s274_s4 = int_to_ptr.vmem [resolvable:$true] %s273_s4 }
  0x30   : > { %s561_s8 = sshra.s32 %s276_s20, 4  ;;  %s562_s8 = int_to_ptr.hbm [resolvable:$true] %s561_s8 }
  0x31   : > { %p568_p11 = scmp.lt.s32.totalorder %s562_s8, %s811_s3 }
  0x36   : > { %s485_s9 = spop.drf %484 }
  0x37   : > { %s486_s10 = spop.drf %484  ;;  %s563_s9 = scalar_lea.hbm %s562_s8, 2 }
  0x38   : > { %s238_s11 = ssub.s32 0, %s486_s10  ;;  %p564_p3 = scmp.ne.s32.totalorder %s562_s8, %s563_s9 }
  0x39   : > { %s825_s11 = smov (!%p233_p1, %s238_s11), %s486_s10  ;;  %s567_s10 = scalar_lea.hbm %s811_s3, 12 }
  0x3a   : > { %p395_p7 = scmp.lt.s32.totalorder %s825_s11, 0  ;;  %s244_s19 = sadd.s32 3, %s825_s11 }
  0x3b   : > { %p565_p9 = pnand %p564_p3, %p732_p0  ;;  %p569_p12 = scmp.lt.s32.totalorder %s567_s10, %s563_s9 }
  0x3c   : > { %s827_s19 = smov (!%p395_p7, %s244_s19), %s825_s11 }
  0x3d   : > { %s247_s23 = sld [smem:[#allocation2 + %s827_s19]]  ;;  %p566_p10 = pneg %p565_p9 }
  0x3e   : > { %s250_s21 = sld [smem:[#allocation6 + %s827_s19]]  ;;  %p570_p13 = por %p569_p12, %p568_p11 }
  0x40   : > { %p571_p2 = pnand %p570_p13, %p566_p10 }
  0x43   : > { %v248_v2 = vstv %s247_s23 }
  0x44   : > { %v249_v3 = vmul.f32 %v248_v2, %v246_v0  ;;  %v251_v4 = vstv %s250_s21 }
  0x46   : > { %v252_v5 = vadd.f32 %v251_v4, %v249_v3 }
  0x48   : > { %257 = vst.msk [vmem:[%s232_s29] sm:$0x3] %vm255_vm0, %v252_v5 }
  0x49   : > { %574 = shalt.err (!%p571_p2)
}
  0x4a   : > { %410 = dma.vmem_to_hbm [thread:$0]  (%p732_p0), %s274_s4, 32, %s276_s20, %s259_s15  }
  0x4b PF: > { %p432_p4 = scmp.ge.s32.totalorder %s637_s17, 2  ;;  %s287_s30 = sand.u32 1, %s617_s12  }
  0x4c   : > { %s288_s23 = scalar_lea.sflag [#allocation4], %s287_s30 }
  0x4d   : > { %p424_p6 = pnand %p432_p4, %p706_p5 }
  0x4f   : > { %p425_p8 = pneg %p424_p6 }
  0x51   : > { %612 = dma.done.wait (%p425_p8), %s288_s23, 32  }
  0x52   : > { %614 = vsyncadd (%p425_p8), %s288_s23, 4294967264  ;;  %s21_s17 = sadd.s32 1, %s637_s17   ;;  %s817_s12 = smov %s621_s13 }
  0x53   : > { %p18_p1 = scmp.ge.s32.totalorder %s21_s17, 8   ;;  %s818_s13 = smov %s625_s14 }
  0x54   : > { %s819_s14 = smov %s742_s18  ;;  %s820_s15 = smov %s633_s16 }
  0x55   : > { %s821_s16 = smov %s823_s5  ;;  %20 = sbr.rel (!%p18_p1) target bundleno = 8 (0x8), region = 86 }
  0x5a   :  { %294 = vsyncpa [#allocation3], 1 }
  0x5b   :  { %296 = vsyncpa [#allocation3 + $0x1], 1 }
  0x5c   :  { %297 = vsyncpa [#allocation4], 1 }
  0x5d   :  { %299 = vsyncpa [#allocation4 + $0x1], 1 }
  0x5e   :  { %300 = vsyncpa [#allocation5], 1 }
  0x5f   :  { %302 = vsyncpa [#allocation5 + $0x1], 1 }
  0x60   :  { %303 = vsyncpa [#allocation7], 1 }

</bundles_post_ra>
